<compile_context>
chip_gen: v7x
topology: tpu7x:2x2x1
jax: 0.10.0
libtpu: 0.0.40
codegen_flags: <defaults>
</compile_context>

<pallas_src>
import functools
import math

import jax
import jax.numpy as jnp
from jax import lax
from jax.experimental import pallas as pl
from jax.experimental.pallas import tpu as pltpu

_GELU_C = math.sqrt(2.0 / math.pi)


def _gelu_tanh(h):
    # Exactly the module's GELU: 0.5*h*(1 + tanh(sqrt(2/pi)*(h + 0.044715*h^3))).
    return 0.5 * h * (1.0 + jnp.tanh(_GELU_C * (h + 0.044715 * h * h * h)))


def _ffn_kernel(x_ref, w1_ref, b1_ref, w2_ref, b2_ref, o_ref, acc_ref, *, tile_h):
    """Computes one (block_m, D) output slab.

    x_ref : (block_m, D) input dtype     w1_ref: (D, H) bf16   b1_ref: (1, H) f32
    w2_ref: (H, D) bf16                  b2_ref: (1, D) f32    o_ref : (block_m, D)
    acc_ref: (block_m, D) f32 scratch accumulator.
    """
    x = x_ref[...].astype(jnp.bfloat16)
    acc_ref[...] = jnp.zeros_like(acc_ref)

    n_chunks = w1_ref.shape[1] // tile_h

    def body(k, carry):
        h0 = pl.multiple_of(k * tile_h, tile_h)
        # First projection chunk: bf16 operands, f32 accumulation on the MXU.
        h = jnp.dot(x, w1_ref[:, pl.ds(h0, tile_h)],
                    preferred_element_type=jnp.float32)
        h = h + b1_ref[:, pl.ds(h0, tile_h)]                  # (block_m, tile_h) f32
        # GELU (tanh approximation), kept in f32.
        g = _gelu_tanh(h)
        # Second projection chunk accumulated into the output slab.
        acc_ref[...] += jnp.dot(g.astype(jnp.bfloat16),
                                w2_ref[pl.ds(h0, tile_h), :],
                                preferred_element_type=jnp.float32)
        return carry

    lax.fori_loop(0, n_chunks, body, 0, unroll=(n_chunks <= 8))

    # Single whole-block store (lane-dense when D is a multiple of 128).
    o_ref[...] = (acc_ref[...] + b2_ref[...]).astype(o_ref.dtype)


def _round_up(x, m):
    return (x + m - 1) // m * m


def _vmem_capacity_bytes():
    try:
        return int(pltpu.get_tpu_info().vmem_capacity_bytes)
    except Exception:
        return 64 * 1024 * 1024  # conservative fallback (v7x per-TC VMEM)


def feedforward_forward(x, w1, b1, w2, b2, *, block_m=None, tile_h=512):
    """ViT FeedForward: y = GELU_tanh(x @ W1 + b1) @ W2 + b2  (dropout p=0 == identity).

    x: [B, N, D]; w1: [D, H]; b1: [H]; w2: [H, D]; b2: [D].  Returns [B, N, D].
    D and H should be multiples of 128 for lane-dense stores / full MXU tiles.
    """
    B, N, D = x.shape
    H = w1.shape[1]
    M = B * N

    vmem_cap = _vmem_capacity_bytes()
    if block_m is None:
        # 1024-row slabs on 128 MiB VMEM parts (v5e/v6e), 512 on 64 MiB (v7x).
        block_m = 1024 if vmem_cap >= 128 * 1024 * 1024 else 512
    block_m = _round_up(block_m, 8)
    block_m = min(block_m, _round_up(M, 8))

    # Hidden-dim chunk used inside the kernel; must divide H.
    tile_h = min(tile_h, H)
    if H % tile_h != 0:
        tile_h = H  # TODO(synk): handle ragged H with a masked final chunk.

    # Flatten batch*tokens and pad so a cdiv grid of full block_m slabs covers M.
    x2 = x.reshape(M, D)
    M_pad = _round_up(M, block_m)
    if M_pad != M:
        x2 = jnp.pad(x2, ((0, M_pad - M), (0, 0)))
    grid = (M_pad // block_m,)

    # Weights cast to bf16 once (outside the kernel); biases as (1, ·) f32 rows.
    w1_b = w1.astype(jnp.bfloat16)
    w2_b = w2.astype(jnp.bfloat16)
    b1_2 = b1.reshape(1, H).astype(jnp.float32)
    b2_2 = b2.reshape(1, D).astype(jnp.float32)

    itemsize = jnp.dtype(x.dtype).itemsize
    cost = pl.CostEstimate(
        flops=4 * M_pad * D * H,                 # two M x D x H matmuls
        transcendentals=M_pad * H,               # one tanh per hidden element
        bytes_accessed=(M_pad * D * itemsize     # x slabs
                        + 2 * D * H * 2          # bf16 weights
                        + (H + D) * 4            # biases
                        + M_pad * D * itemsize)) # output

    # Scoped VMEM: ~100 MiB on 128 MiB parts, ~54 MiB on v7x (64 MiB physical).
    vmem_limit = min(100 * 1024 * 1024, int(vmem_cap * 0.85))

    weight_mode = pl.Buffered(1)  # constant index_map -> single-buffer the weights

    out = pl.pallas_call(
        functools.partial(_ffn_kernel, tile_h=tile_h),
        out_shape=jax.ShapeDtypeStruct((M_pad, D), x.dtype),
        grid_spec=pltpu.PrefetchScalarGridSpec(
            num_scalar_prefetch=0,
            grid=grid,
            in_specs=[
                pl.BlockSpec((block_m, D), lambda i: (i, 0)),   # x slab (double-buffered)
                pl.BlockSpec((D, H), lambda i: (0, 0), pipeline_mode=weight_mode),
                pl.BlockSpec((1, H), lambda i: (0, 0), pipeline_mode=weight_mode),
                pl.BlockSpec((H, D), lambda i: (0, 0), pipeline_mode=weight_mode),
                pl.BlockSpec((1, D), lambda i: (0, 0), pipeline_mode=weight_mode),
            ],
            out_specs=pl.BlockSpec((block_m, D), lambda i: (i, 0)),
            scratch_shapes=[pltpu.VMEM((block_m, D), jnp.float32)],
        ),
        compiler_params=pltpu.CompilerParams(
            dimension_semantics=("parallel",),
            vmem_limit_bytes=vmem_limit),
        cost_estimate=cost,
    )(x2, w1_b, b1_2, w2_b, b2_2)

    if M_pad != M:
        out = out[:M]
    return out.reshape(B, N, D)


def feedforward_reference(x, w1, b1, w2, b2):
    """Pure-JAX f32 reference mirroring the PyTorch forward."""
    h = x @ w1 + b1
    g = _gelu_tanh(h)
    return g @ w2 + b2


if __name__ == "__main__":
    # Small, lane-friendly shapes consistent with the module: dim=128, hidden=256.
    B, N, dim, hidden_dim = 2, 8, 128, 256

    key = jax.random.PRNGKey(0)
    k_x, k_w1, k_b1, k_w2, k_b2 = jax.random.split(key, 5)

    x = jax.random.normal(k_x, (B, N, dim), dtype=jnp.float32)
    # Deterministic parameter init (Kaiming-uniform-ish scaling, like nn.Linear).
    w1 = jax.random.uniform(k_w1, (dim, hidden_dim), dtype=jnp.float32,
                            minval=-1.0, maxval=1.0) / math.sqrt(dim)
    b1 = jax.random.uniform(k_b1, (hidden_dim,), dtype=jnp.float32,
                            minval=-1.0, maxval=1.0) / math.sqrt(dim)
    w2 = jax.random.uniform(k_w2, (hidden_dim, dim), dtype=jnp.float32,
                            minval=-1.0, maxval=1.0) / math.sqrt(hidden_dim)
    b2 = jax.random.uniform(k_b2, (dim,), dtype=jnp.float32,
                            minval=-1.0, maxval=1.0) / math.sqrt(hidden_dim)

    y = feedforward_forward(x, w1, b1, w2, b2)
    y = jax.block_until_ready(y)

    y_ref = feedforward_reference(x, w1, b1, w2, b2)
    assert y.shape == (B, N, dim)
    # bf16 matmul operands with f32 accumulation -> loosened tolerance.
    assert jnp.allclose(y, y_ref, atol=3e-2, rtol=3e-2), "mismatch vs reference"

    print("KERNEL_OK")
</pallas_src>

<mosaic_0001>
module attributes {stable_mosaic.version = 11 : i64} {
  func.func @_ffn_kernel(%arg0: i32, %arg1: memref<16x128xf32, #tpu.memory_space<vmem>>, %arg2: memref<128x256xbf16, #tpu.memory_space<vmem>>, %arg3: memref<1x256xf32, #tpu.memory_space<vmem>>, %arg4: memref<256x128xbf16, #tpu.memory_space<vmem>>, %arg5: memref<1x128xf32, #tpu.memory_space<vmem>>, %arg6: memref<16x128xf32, #tpu.memory_space<vmem>>, %arg7: memref<16x128xf32, #tpu.memory_space<vmem>>) attributes {dimension_semantics = [#tpu.dimension_semantics<parallel>], iteration_bounds = array<i64: 1>, scalar_prefetch = 0 : i64, scratch_operands = 1 : i64, tpu.core_type = #tpu.core_type<tc>, window_params = [{transform_indices = @transform_0, window_bounds = array<i64: 16, 128>}, {pipeline_mode = #tpu.pipeline_mode<synchronous>, transform_indices = @transform_1, window_bounds = array<i64: 128, 256>}, {pipeline_mode = #tpu.pipeline_mode<synchronous>, transform_indices = @transform_2, window_bounds = array<i64: 1, 256>}, {pipeline_mode = #tpu.pipeline_mode<synchronous>, transform_indices = @transform_3, window_bounds = array<i64: 256, 128>}, {pipeline_mode = #tpu.pipeline_mode<synchronous>, transform_indices = @transform_4, window_bounds = array<i64: 1, 128>}, {transform_indices = @transform_5, window_bounds = array<i64: 16, 128>}]} {
    %c0 = arith.constant 0 : index
    %c0_0 = arith.constant 0 : index
    %0 = vector.load %arg1[%c0, %c0_0] : memref<16x128xf32, #tpu.memory_space<vmem>>, vector<16x128xf32>
    %1 = arith.truncf %0 : vector<16x128xf32> to vector<16x128xbf16>
    %cst = arith.constant 0.000000e+00 : f32
    %2 = vector.broadcast %cst : f32 to vector<16x128xf32>
    %c0_1 = arith.constant 0 : index
    %c0_2 = arith.constant 0 : index
    %3 = vector.load %arg7[%c0_1, %c0_2] : memref<16x128xf32, #tpu.memory_space<vmem>>, vector<16x128xf32>
    tpu.vector_store %arg7[%c0_1, %c0_2], %2 {strides = array<i32>} : memref<16x128xf32, #tpu.memory_space<vmem>>, vector<16x128xf32>,
    %c0_i32 = arith.constant 0 : i32
    %c256_i32 = arith.constant 256 : i32
    %4 = arith.muli %c0_i32, %c256_i32 : i32
    %5 = tpu.assume_multiple %4, 256 : i32
    %c0_3 = arith.constant 0 : index
    %6 = arith.index_cast %5 : i32 to index
    %7 = vector.load %arg2[%c0_3, %6] : memref<128x256xbf16, #tpu.memory_space<vmem>>, vector<128x256xbf16>
    %cst_4 = arith.constant dense<0.000000e+00> : vector<16x256xf32>
    %8 = tpu.matmul %1, %7, %cst_4 {dimension_numbers = #tpu.dot_dimension_numbers<[1], [0], [0], [1], [0, 0, 1, 1], [], []>} : vector<16x128xbf16>, vector<128x256xbf16>, vector<16x256xf32> -> vector<16x256xf32>
    %c0_5 = arith.constant 0 : index
    %9 = arith.index_cast %5 : i32 to index
    %10 = vector.load %arg3[%c0_5, %9] : memref<1x256xf32, #tpu.memory_space<vmem>>, vector<1x256xf32>
    %11 = vector.broadcast %10 : vector<1x256xf32> to vector<16x256xf32>
    %12 = arith.addf %8, %11 : vector<16x256xf32>
    %cst_6 = arith.constant 5.000000e-01 : f32
    %13 = vector.broadcast %cst_6 : f32 to vector<16x256xf32>
    %14 = arith.mulf %13, %12 : vector<16x256xf32>
    %cst_7 = arith.constant 4.471500e-02 : f32
    %15 = vector.broadcast %cst_7 : f32 to vector<16x256xf32>
    %16 = arith.mulf %15, %12 : vector<16x256xf32>
    %17 = arith.mulf %16, %12 : vector<16x256xf32>
    %18 = arith.mulf %17, %12 : vector<16x256xf32>
    %19 = arith.addf %12, %18 : vector<16x256xf32>
    %cst_8 = arith.constant 0.797884583 : f32
    %20 = vector.broadcast %cst_8 : f32 to vector<16x256xf32>
    %21 = arith.mulf %20, %19 : vector<16x256xf32>
    %22 = math.tanh %21 : vector<16x256xf32>
    %cst_9 = arith.constant 1.000000e+00 : f32
    %23 = vector.broadcast %cst_9 : f32 to vector<16x256xf32>
    %24 = arith.addf %23, %22 : vector<16x256xf32>
    %25 = arith.mulf %14, %24 : vector<16x256xf32>
    %c0_10 = arith.constant 0 : index
    %c0_11 = arith.constant 0 : index
    %26 = vector.load %arg7[%c0_10, %c0_11] : memref<16x128xf32, #tpu.memory_space<vmem>>, vector<16x128xf32>
    %27 = arith.truncf %25 : vector<16x256xf32> to vector<16x256xbf16>
    %28 = arith.index_cast %5 : i32 to index
    %c0_12 = arith.constant 0 : index
    %29 = vector.load %arg4[%28, %c0_12] : memref<256x128xbf16, #tpu.memory_space<vmem>>, vector<256x128xbf16>
    %cst_13 = arith.constant dense<0.000000e+00> : vector<16x128xf32>
    %30 = tpu.matmul %27, %29, %cst_13 {dimension_numbers = #tpu.dot_dimension_numbers<[1], [0], [0], [1], [0, 0, 1, 1], [], []>} : vector<16x256xbf16>, vector<256x128xbf16>, vector<16x128xf32> -> vector<16x128xf32>
    %31 = arith.addf %26, %30 : vector<16x128xf32>
    %c0_14 = arith.constant 0 : index
    %c0_15 = arith.constant 0 : index
    %32 = vector.load %arg7[%c0_14, %c0_15] : memref<16x128xf32, #tpu.memory_space<vmem>>, vector<16x128xf32>
    tpu.vector_store %arg7[%c0_14, %c0_15], %31 {strides = array<i32>} : memref<16x128xf32, #tpu.memory_space<vmem>>, vector<16x128xf32>,
    %c1_i32 = arith.constant 1 : i32
    %c0_16 = arith.constant 0 : index
    %c0_17 = arith.constant 0 : index
    %33 = vector.load %arg7[%c0_16, %c0_17] : memref<16x128xf32, #tpu.memory_space<vmem>>, vector<16x128xf32>
    %c0_18 = arith.constant 0 : index
    %c0_19 = arith.constant 0 : index
    %34 = vector.load %arg5[%c0_18, %c0_19] : memref<1x128xf32, #tpu.memory_space<vmem>>, vector<1x128xf32>
    %35 = vector.broadcast %34 : vector<1x128xf32> to vector<16x128xf32>
    %36 = arith.addf %33, %35 : vector<16x128xf32>
    %c0_20 = arith.constant 0 : index
    %c0_21 = arith.constant 0 : index
    %37 = vector.load %arg6[%c0_20, %c0_21] : memref<16x128xf32, #tpu.memory_space<vmem>>, vector<16x128xf32>
    tpu.vector_store %arg6[%c0_20, %c0_21], %36 {strides = array<i32>} : memref<16x128xf32, #tpu.memory_space<vmem>>, vector<16x128xf32>,
    return
  }
  func.func @transform_0(%arg0: i32) -> (i32, i32) {
    %c0_i32 = arith.constant 0 : i32
    %c0_i32_0 = arith.constant 0 : i32
    return %arg0, %c0_i32 : i32, i32
  }
  func.func @transform_1(%arg0: i32) -> (i32, i32) {
    %c0_i32 = arith.constant 0 : i32
    %c0_i32_0 = arith.constant 0 : i32
    %c0_i32_1 = arith.constant 0 : i32
    return %c0_i32, %c0_i32_0 : i32, i32
  }
  func.func @transform_2(%arg0: i32) -> (i32, i32) {
    %c0_i32 = arith.constant 0 : i32
    %c0_i32_0 = arith.constant 0 : i32
    %c0_i32_1 = arith.constant 0 : i32
    return %c0_i32, %c0_i32_0 : i32, i32
  }
  func.func @transform_3(%arg0: i32) -> (i32, i32) {
    %c0_i32 = arith.constant 0 : i32
    %c0_i32_0 = arith.constant 0 : i32
    %c0_i32_1 = arith.constant 0 : i32
    return %c0_i32, %c0_i32_0 : i32, i32
  }
  func.func @transform_4(%arg0: i32) -> (i32, i32) {
    %c0_i32 = arith.constant 0 : i32
    %c0_i32_0 = arith.constant 0 : i32
    %c0_i32_1 = arith.constant 0 : i32
    return %c0_i32, %c0_i32_0 : i32, i32
  }
  func.func @transform_5(%arg0: i32) -> (i32, i32) {
    %c0_i32 = arith.constant 0 : i32
    %c0_i32_0 = arith.constant 0 : i32
    return %arg0, %c0_i32 : i32, i32
  }
}

</mosaic_0001>

<bundles_post_ra>
// kernel: tpu_custom_call.1
= control target key start
LH: loop header
LB: loop body
LE: loop exit
PB: predicated region body
PF: predicated region fallthrough
CT: control target
= control target key end

     0   :  { %10 = vsyncpa [#allocation4], 0  ;;  %s778_s0 = inlined_call_operand.hbm [shape: f32[16,128], index: 0, kind: input, shape index: {}]   ;;  %s779_s1 = inlined_call_operand.hbm [shape: bf16[128,256], index: 1, kind: input, shape index: {}]   ;;  %s780_s2 = inlined_call_operand.vmem [shape: f32[1,256], index: 2, kind: input, shape index: {}]   ;;  %s781_s3 = inlined_call_operand.hbm [shape: bf16[256,128], index: 3, kind: input, shape index: {}]   ;;  %s782_s4 = inlined_call_operand.vmem [shape: f32[1,128], index: 4, kind: input, shape index: {}]   ;;  %s783_s5 = inlined_call_operand.hbm [shape: f32[16,128], index: 5, kind: output, shape index: {}]  }
   0x1   :  { %11 = vsyncpa [#allocation7], 0 }
   0x2   :  { %12 = vsyncpa [#allocation5], 0  ;;  %s669_s18 = smov [#allocation6]   ;;  %s670_s20 = smov [#allocation3]  }
   0x3   :  { %s30_s19 = sshll.u32 %s669_s18, 4  ;;  %s18_s21 = sshll.u32 %s670_s20, 4  ;;  %s31_s19 = int_to_ptr.vmem [resolvable:$true] %s30_s19  ;;  %s708_s21 = int_to_ptr.vmem [resolvable:$true] %s18_s21 }
   0x4   :  { %s575_s24 = scalar_lea.hbm %s779_s1, 2048 }
   0x5   :  { %p576_p0 = scmp.ne.s32.totalorder %s779_s1, %s575_s24  ;;  %p579_p1 = scmp.lt.u32.totalorder %s575_s24, %s779_s1 }
   0x7   :  { %p581_p2 = pnand %p579_p1, %p576_p0 }
   0x9   :  { %584 = shalt.err (!%p581_p2)
}
   0xa   :  { %s585_s29 = scalar_lea.vmem %s31_s19, 2048  ;;  %p590_p4 = scmp.lt.s32.totalorder %s31_s19, %s31_s19 }
   0xb   :  { %p586_p3 = scmp.ne.s32.totalorder %s31_s19, %s585_s29  ;;  %p591_p5 = scmp.lt.s32.totalorder %s585_s29, %s585_s29 }
   0xd   :  { %p592_p6 = por %p591_p5, %p590_p4 }
   0xf   :  { %p593_p7 = pnand %p592_p6, %p586_p3 }
  0x11   :  { %596 = shalt.err (!%p593_p7)
}
  0x12   :  { %s671_s30 = smov 128   ;;  %s672_s6 = smov 8  }
  0x13   :  { %36 = dma.hbm_to_vmem [thread:$0]  %s779_s1, 2048, %s31_s19, [#allocation7], %s671_s30, %s671_s30, %s672_s6  }
  0x14   :  { %s597_s11 = scalar_lea.hbm %s778_s0, 256 }
  0x15   :  { %p598_p8 = scmp.ne.s32.totalorder %s778_s0, %s597_s11  ;;  %p601_p9 = scmp.lt.u32.totalorder %s597_s11, %s778_s0 }
  0x17   :  { %p603_p10 = pnand %p601_p9, %p598_p8 }
  0x19   :  { %606 = shalt.err (!%p603_p10)
}
  0x1a   :  { %s607_s16 = scalar_lea.vmem %s708_s21, 256  ;;  %p612_p12 = scmp.lt.s32.totalorder %s708_s21, %s708_s21 }
  0x1b   :  { %p608_p11 = scmp.ne.s32.totalorder %s708_s21, %s607_s16  ;;  %p613_p13 = scmp.lt.s32.totalorder %s607_s16, %s607_s16 }
  0x1d   :  { %p614_p0 = por %p613_p13, %p612_p12 }
  0x1f   :  { %p615_p1 = pnand %p614_p0, %p608_p11 }
  0x21   :  { %618 = shalt.err (!%p615_p1)
}
  0x22   :  { %24 = dma.hbm_to_vmem [thread:$0]  %s778_s0, 256, %s708_s21, [#allocation4], %s671_s30, %s671_s30, %s672_s6  }
  0x23   :  { %s673_s18 = smov [#allocation8]   ;;  %s619_s23 = scalar_lea.hbm %s781_s3, 2048 }
  0x24   :  { %s44_s19 = sshll.u32 %s673_s18, 4  ;;  %p620_p2 = scmp.ne.s32.totalorder %s781_s3, %s619_s23  ;;  %s45_s19 = int_to_ptr.vmem [resolvable:$true] %s44_s19 }
  0x25   :  { %p623_p3 = scmp.lt.u32.totalorder %s619_s23, %s781_s3 }
  0x27   :  { %p625_p4 = pnand %p623_p3, %p620_p2 }
  0x29   :  { %628 = shalt.err (!%p625_p4)
}
  0x2a   :  { %s629_s28 = scalar_lea.vmem %s45_s19, 2048  ;;  %p634_p6 = scmp.lt.s32.totalorder %s45_s19, %s45_s19 }
  0x2b   :  { %p630_p5 = scmp.ne.s32.totalorder %s45_s19, %s629_s28  ;;  %p635_p7 = scmp.lt.s32.totalorder %s629_s28, %s629_s28 }
  0x2d   :  { %p636_p8 = por %p635_p7, %p634_p6 }
  0x2f   :  { %p637_p9 = pnand %p636_p8, %p630_p5 }
  0x31   :  { %640 = shalt.err (!%p637_p9)
}
  0x32   :  { %s674_s0 = smov 64   ;;  %s675_s21 = smov 4  }
  0x33   :  { %50 = dma.hbm_to_vmem [thread:$0]  %s781_s3, 2048, %s45_s19, [#allocation7], %s674_s0, %s674_s0, %s675_s21  }
  0x34   :  { %663 = dma.done.wait [#allocation4], 256  }
  0x35   :  { %664 = vsyncadd [#allocation4], 4294967040 }
  0x36   :  { %665 = dma.done.wait [#allocation7], 4096  }
  0x37   :  { %666 = vsyncadd [#allocation7], 4294963200  ;;  %v676_v0 = vmov 0   ;;  %v527_v1 = vld [vmem:[#allocation6 + $0x4] ss:$8 sps:$4 sm:$0xff]   ;;  %v63_v17 = vld [vmem:[#allocation3] sm:$0xff]  ;;  %v86_v36 = vlaneseq }
  0x38   :  { %208 = vmatprep.mubr.bf16.mxu0 %v676_v0  ;;  %v529_v2 = vld [vmem:[#allocation6] ss:$8 sps:$4 sm:$0xff]   ;;  %176 = vmatprep.subr.bf16.mxu0 %v527_v1  ;;  %v530_v3 = vld [vmem:[#allocation6 + $0x14] ss:$8 sps:$4 sm:$0xff]   ;;  %v532_v4 = vld [vmem:[#allocation6 + $0x10] ss:$8 sps:$4 sm:$0xff]  }
  0x39   :  { %177 = vmatpush1.bf16.msra.mxu0 %v529_v2  ;;  %v533_v5 = vld [vmem:[#allocation6 + $0x24] ss:$8 sps:$4 sm:$0xff]   ;;  %v535_v6 = vld [vmem:[#allocation6 + $0x20] ss:$8 sps:$4 sm:$0xff]   ;;  %v536_v7 = vld [vmem:[#allocation6 + $0x34] ss:$8 sps:$4 sm:$0xff]  }
  0x3a   :  { %178 = vmatprep.subr.bf16.mxu0 %v530_v3  ;;  %v538_v8 = vld [vmem:[#allocation6 + $0x30] ss:$8 sps:$4 sm:$0xff]   ;;  %v539_v9 = vld [vmem:[#allocation6 + $0x44] ss:$8 sps:$4 sm:$0xff]   ;;  %v541_v10 = vld [vmem:[#allocation6 + $0x40] ss:$8 sps:$4 sm:$0xff]  }
  0x3b   :  { %v542_v11 = vld [vmem:[#allocation6 + $0x54] ss:$8 sps:$4 sm:$0xff]   ;;  %v544_v12 = vld [vmem:[#allocation6 + $0x50] ss:$8 sps:$4 sm:$0xff]   ;;  %v545_v13 = vld [vmem:[#allocation6 + $0x64] ss:$8 sps:$4 sm:$0xff]  }
  0x3c   :  { %v547_v14 = vld [vmem:[#allocation6 + $0x60] ss:$8 sps:$4 sm:$0xff]   ;;  %v548_v15 = vld [vmem:[#allocation6 + $0x74] ss:$8 sps:$4 sm:$0xff]   ;;  %v550_v16 = vld [vmem:[#allocation6 + $0x70] ss:$8 sps:$4 sm:$0xff]  }
  0x3d   :  { %179 = vmatpush1.bf16.msra.mxu0 %v532_v4  ;;  %v64_v18 = vld [vmem:[#allocation3 + $0x8] sm:$0xff]  ;;  %v551_v20 = vld [vmem:[#allocation8 + $0x40] sm:$0xff]   ;;  %v553_v22 = vld [vmem:[#allocation8 + $0x48] sm:$0xff]   ;;  %v87_v37 = vshrl.u32 %v86_v36, 7  ;;  %s677_s10 = smov [#allocation9]  }
  0x3e   :  { %180 = vmatprep.subr.bf16.mxu0 %v533_v5  ;;  %v65_v19 = vpack.c.bf16 %v64_v18, %v63_v17  ;;  %v552_v21 = vld [vmem:[#allocation8] sm:$0xff]   ;;  %496 = vmatprep.subr.bf16.mxu1 %v551_v20  ;;  %v554_v23 = vld [vmem:[#allocation8 + $0x8] sm:$0xff]   ;;  %v555_v24 = vld [vmem:[#allocation8 + $0x50] sm:$0xff]   ;;  %s450_s11 = sshll.u32 %s677_s10, 4  ;;  %s451_s11 = int_to_ptr.vmem [resolvable:$true] %s450_s11 }
  0x3f   :  { %497 = vmatpush3.bf16.msra.mxu1 %v552_v21  ;;  %v556_v25 = vld [vmem:[#allocation8 + $0x10] sm:$0xff]   ;;  %v557_v26 = vld [vmem:[#allocation8 + $0x58] sm:$0xff]   ;;  %v559_v28 = vld [vmem:[#allocation8 + $0x60] sm:$0xff]   ;;  %v88_v38 = vsub.s32 0, %v87_v37  ;;  %v92_v40 = vsub.s32 1, %v87_v37  ;;  %s641_s12 = scalar_lea.vmem %s451_s11, 256  ;;  %p646_p11 = scmp.lt.s32.totalorder %s451_s11, %s451_s11 }
  0x40   :  { %498 = vmatprep.subr.bf16.mxu1 %v553_v22  ;;  %v558_v27 = vld [vmem:[#allocation8 + $0x18] sm:$0xff]   ;;  %v560_v29 = vld [vmem:[#allocation8 + $0x20] sm:$0xff]   ;;  %v561_v30 = vld [vmem:[#allocation8 + $0x68] sm:$0xff]   ;;  %p642_p10 = scmp.ne.s32.totalorder %s451_s11, %s641_s12  ;;  %p647_p12 = scmp.lt.s32.totalorder %s641_s12, %s641_s12 }
  0x41   :  { %181 = vmatpush1.bf16.msra.mxu0 %v535_v6  ;;  %v562_v31 = vld [vmem:[#allocation8 + $0x28] sm:$0xff]   ;;  %v563_v32 = vld [vmem:[#allocation8 + $0x70] sm:$0xff]   ;;  %v565_v34 = vld [vmem:[#allocation8 + $0x78] sm:$0xff]  }
  0x42   :  { %182 = vmatprep.subr.bf16.mxu0 %v536_v7  ;;  %v564_v33 = vld [vmem:[#allocation8 + $0x30] sm:$0xff]   ;;  %v566_v35 = vld [vmem:[#allocation8 + $0x38] sm:$0xff]   ;;  %p648_p13 = por %p647_p12, %p646_p11 }
  0x43   :  { %499 = vmatpush3.bf16.msra.mxu1 %v554_v23  ;;  %v84_v39 = vld [vmem:[%s780_s2] sm:$0x3] }
  0x44   :  { %500 = vmatprep.subr.bf16.mxu1 %v555_v24  ;;  %v89_v41 = vrot.slane %v84_v39, %v88_v38  ;;  %v93_v42 = vrot.slane %v84_v39, %v92_v40  ;;  %p649_p0 = pnand %p648_p13, %p642_p10 }
  0x45   :  { %183 = vmatpush1.bf16.msra.mxu0 %v538_v8 }
  0x46   :  { %184 = vmatprep.subr.bf16.mxu0 %v539_v9 }
  0x47   :  { %501 = vmatpush3.bf16.msra.mxu1 %v556_v25 }
  0x48   :  { %502 = vmatprep.subr.bf16.mxu1 %v557_v26 }
  0x49   :  { %185 = vmatpush1.bf16.msra.mxu0 %v541_v10 }
  0x4a   :  { %186 = vmatprep.subr.bf16.mxu0 %v542_v11 }
  0x4b   :  { %503 = vmatpush3.bf16.msra.mxu1 %v558_v27  ;;  %v495_v27 = vld [vmem:[%s782_s4] ss:$0 sm:$0xff] }
  0x4c   :  { %504 = vmatprep.subr.bf16.mxu1 %v559_v28 }
  0x4d   :  { %187 = vmatpush1.bf16.msra.mxu0 %v544_v12 }
  0x4e   :  { %188 = vmatprep.subr.bf16.mxu0 %v545_v13 }
  0x4f   :  { %505 = vmatpush3.bf16.msra.mxu1 %v560_v29 }
  0x50   :  { %506 = vmatprep.subr.bf16.mxu1 %v561_v30 }
  0x51   :  { %189 = vmatpush1.bf16.msra.mxu0 %v547_v14 }
  0x52   :  { %190 = vmatprep.subr.bf16.mxu0 %v548_v15 }
  0x53   :  { %507 = vmatpush3.bf16.msra.mxu1 %v562_v31 }
  0x54   :  { %508 = vmatprep.subr.bf16.mxu1 %v563_v32 }
  0x55   :  { %191 = vmatpush1.bf16.msra.mxu0 %v550_v16 }
  0x57   :  { %509 = vmatpush3.bf16.msra.mxu1 %v564_v33 }
  0x58   :  { %209 = vmatmul.mubr.bf16.vlgmr.msra.gmra.mrb[0].mxu0 %v65_v19  ;;  %510 = vmatprep.subr.bf16.mxu1 %v565_v34 }
  0x5b   :  { %511 = vmatpush3.bf16.msra.mxu1 %v566_v35 }
 0x12b   :  { %v210_v43 = vpop.f32.mrb[0].mxu0 }
 0x12c   :  { %v211_v44 = vadd.f32 %v210_v43, %v89_v41  ;;  %v212_v45 = vpop.f32.mrb[1].mxu0 }
 0x12d   :  { %v213_v46 = vadd.f32 %v212_v45, %v93_v42  ;;  %v214_v47 = vpop.f32.mrb[2].mxu0 }
 0x12e   :  { %v223_v48 = vmul.f32 0.044715, %v211_v44  ;;  %v215_v49 = vadd.f32 %v214_v47, %v89_v41  ;;  %v216_v50 = vpop.f32.mrb[3].mxu0  ;;  %v219_v13 = vmul.f32 0.5, %v211_v44 }
 0x12f   :  { %v224_v51 = vmul.f32 0.044715, %v213_v46  ;;  %v217_v52 = vadd.f32 %v216_v50, %v93_v42  ;;  %v220_v16 = vmul.f32 0.5, %v213_v46 }
 0x130   :  { %v227_v53 = vmul.f32 %v223_v48, %v211_v44  ;;  %v225_v54 = vmul.f32 0.044715, %v215_v49  ;;  %v221_v14 = vmul.f32 0.5, %v215_v49 }
 0x131   :  { %v226_v55 = vmul.f32 0.044715, %v217_v52  ;;  %v228_v56 = vmul.f32 %v224_v51, %v213_v46  ;;  %v222_v17 = vmul.f32 0.5, %v217_v52 }
 0x132   :  { %v231_v57 = vmul.f32 %v227_v53, %v211_v44  ;;  %v229_v58 = vmul.f32 %v225_v54, %v215_v49 }
 0x133   :  { %v230_v59 = vmul.f32 %v226_v55, %v217_v52  ;;  %v232_v60 = vmul.f32 %v228_v56, %v213_v46 }
 0x134   :  { %v233_v61 = vmul.f32 %v229_v58, %v215_v49  ;;  %v235_v62 = vadd.f32 %v231_v57, %v211_v44 }
 0x135   :  { %v234_v63 = vmul.f32 %v230_v59, %v217_v52  ;;  %v236_v0 = vadd.f32 %v232_v60, %v213_v46 }
 0x136   :  { %v237_v1 = vadd.f32 %v233_v61, %v215_v49  ;;  %v239_v2 = vmul.f32 0.7978846, %v235_v62 }
 0x137   :  { %v238_v3 = vadd.f32 %v234_v63, %v217_v52  ;;  %v240_v4 = vmul.f32 0.7978846, %v236_v0 }
 0x138   :  { %v241_v5 = vmul.f32 0.7978846, %v237_v1  ;;  %567 = vtanh.f32 %v239_v2 }
 0x139   :  { %v242_v6 = vmul.f32 0.7978846, %v238_v3  ;;  %569 = vtanh.f32 %v240_v4 }
 0x13a   :  { %571 = vtanh.f32 %v241_v5 }
 0x13b   :  { %573 = vtanh.f32 %v242_v6 }
 0x142   :  { %v568_v7 = vpop.eup %567 }
 0x143   :  { %v570_v8 = vpop.eup %569  ;;  %v247_v9 = vadd.f32 1.0, %v568_v7 }
 0x144   :  { %v572_v10 = vpop.eup %571  ;;  %v248_v11 = vadd.f32 1.0, %v570_v8 }
 0x145   :  { %v574_v12 = vpop.eup %573  ;;  %v249_v15 = vadd.f32 1.0, %v572_v10  ;;  %v251_v19 = vmul.f32 %v247_v9, %v219_v13 }
 0x146   :  { %v250_v18 = vadd.f32 1.0, %v574_v12  ;;  %v252_v21 = vmul.f32 %v248_v11, %v220_v16 }
 0x147   :  { %v253_v20 = vmul.f32 %v249_v15, %v221_v14 }
 0x148   :  { %v254_v22 = vmul.f32 %v250_v18, %v222_v17 }
 0x149   :  { %v257_v23 = vpack.c.bf16 %v253_v20, %v251_v19 }
 0x14a   :  { %v258_v24 = vpack.c.bf16 %v254_v22, %v252_v21 }
 0x14c   :  { %419 = vmatprep.mubr.bf16.mxu1 %v258_v24 }
 0x14d   :  { %420 = vmatmul.mubr.bf16.vlgmr.msra.gmra.mrb[0].mxu1 %v257_v23 }
 0x220   :  { %v512_v25 = vpop.f32.mrb[0].mxu1 }
 0x221   :  { %v513_v26 = vpop.f32.mrb[1].mxu1 }
 0x222   :  { %v514_v28 = vadd.f32 %v513_v26, %v512_v25  ;;  %v515_v29 = vpop.f32.mrb[2].mxu1 }
 0x223   :  { %v516_v30 = vpop.f32.mrb[3].mxu1 }
 0x224   :  { %v441_v31 = vadd.f32 %v514_v28, %v495_v27  ;;  %v517_v32 = vadd.f32 %v516_v30, %v515_v29 }
 0x226   :  { %443 = vst [vmem:[#allocation9] sm:$0xff] %v441_v31  ;;  %v442_v33 = vadd.f32 %v517_v32, %v495_v27 }
 0x228   :  { %444 = vst [vmem:[#allocation9 + $0x8] sm:$0xff] %v442_v33 }
 0x229   :  { %652 = shalt.err (!%p649_p0)
}
 0x22a   :  { %s653_s14 = scalar_lea.hbm %s783_s5, 256 }
 0x22b   :  { %p654_p1 = scmp.ne.s32.totalorder %s783_s5, %s653_s14  ;;  %p657_p2 = scmp.lt.u32.totalorder %s653_s14, %s783_s5 }
 0x22d   :  { %p659_p3 = pnand %p657_p2, %p654_p1 }
 0x22f   :  { %662 = shalt.err (!%p659_p3)
}
 0x230   :  { %456 = dma.vmem_to_hbm [thread:$0]  %s451_s11, 256, %s783_s5, [#allocation5], %s671_s30, %s671_s30, %s672_s6  }
 0x231   :  { %667 = dma.done.wait [#allocation5], 256  }
 0x232   :  { %668 = vsyncadd [#allocation5], 4294967040 }
 0x233   :  { %460 = vsyncpa [#allocation4], 1 }
 0x234   :  { %461 = vsyncpa [#allocation7], 1 }
 0x235   :  { %462 = vsyncpa [#allocation5], 1 }

</bundles_post_ra>
